<compile_context>
chip_gen: v5e
topology: v5e:2x2
jax: 0.10.0
libtpu: 0.0.40
codegen_flags: <defaults>
</compile_context>

<pallas_src>
import jax
import jax.numpy as jnp
from jax.experimental import pallas as pl
from jax.experimental.pallas import tpu as pltpu


def _round_up(a, m):
    return ((a + m - 1) // m) * m


def _default_vmem_limit():
    """~3/4 of physical VMEM, capped at 100 MiB (48 MiB on v7x, 96 MiB v5e/v6e)."""
    try:
        cap = int(pltpu.get_tpu_info().vmem_capacity_bytes)
    except Exception:
        cap = 64 * 1024 * 1024  # conservative fallback (v7x-sized)
    return min(cap * 3 // 4, 100 * 1024 * 1024)


def _attention_kernel(x_ref, mask_ref, wt_ref, b_ref, v_ref, o_ref,
                      sx_acc, x_acc, m_acc, l_acc):
    # x_ref   : (TS, TB, H)  sequence/batch tile of x (native (S,B,H) layout)
    # mask_ref: (TS, 1)      additive seq mask: 0 for real rows, -inf for padded rows
    # wt_ref  : (H, H)       Linear weight, pre-transposed (kernel does x @ W^T)
    # b_ref   : (1, H)       Linear bias
    # v_ref   : (H, 1)       attention vector (column, so the matvec runs on the MXU)
    # o_ref   : (TB, H)      context output tile (written on the last S step)
    # scratch : sx_acc (TB,H)  sum_s score*x      x_acc (TB,H)  sum_s x
    #           m_acc  (TB,1)  running max        l_acc (TB,1)  running sum exp
    ts, tb, h = x_ref.shape
    j = pl.program_id(1)

    @pl.when(j == 0)
    def _init():
        sx_acc[...] = jnp.zeros_like(sx_acc)
        x_acc[...] = jnp.zeros_like(x_acc)
        m_acc[...] = jnp.full_like(m_acc, -jnp.inf)
        l_acc[...] = jnp.zeros_like(l_acc)

    x = x_ref[...]                                   # (TS, TB, H), input dtype
    xf = x.astype(jnp.float32)
    # Merge (TS, TB) into the sublane axis: free relayout since TB % 8 == 0.
    x2 = x.reshape(ts * tb, h)

    # z = tanh(x @ W^T + b): one MXU matmul (f32 accumulate) + EUP tanh.
    z = jnp.tanh(
        jnp.dot(x2, wt_ref[...], preferred_element_type=jnp.float32)
        + b_ref[...]
    )                                                # (TS*TB, H) f32

    # scores = z @ v on the MXU (keeps the H-reduction off the XLU).
    s_col = jnp.dot(z, v_ref[...], preferred_element_type=jnp.float32)  # (TS*TB, 1)
    s3 = s_col.reshape(ts, tb, 1)                    # (TS, TB, 1)

    # Online log-sum-exp over the sequence axis; padded rows masked to -inf.
    s_stats = s3 + mask_ref[...][:, :, None]         # (TS, TB, 1)
    m_prev = m_acc[...]                              # (TB, 1)
    m_new = jnp.maximum(m_prev, jnp.max(s_stats, axis=0))
    alpha = jnp.exp(m_prev - m_new)
    l_acc[...] = l_acc[...] * alpha + jnp.sum(jnp.exp(s_stats - m_new[None]), axis=0)
    m_acc[...] = m_new

    # Un-centered accumulators (padded x rows are zero, so raw s3 is safe here).
    # Leading-axis slab reduce over TS == plain VALU adds in this layout.
    sx_acc[...] += jnp.sum(s3 * xf, axis=0)          # (TB, H)
    x_acc[...] += jnp.sum(xf, axis=0)                # (TB, H)

    @pl.when(j == pl.num_programs(1) - 1)
    def _finalize():
        lse = m_acc[...] + jnp.log(l_acc[...])       # (TB, 1)
        # context = sum_s (score - lse) * x = sum_s score*x - lse * sum_s x
        o_ref[...] = (sx_acc[...] - lse * x_acc[...]).astype(o_ref.dtype)


def my_attention_pallas(x_sbh, W, b, v, *, block_b=128, block_s=None,
                        vmem_limit_bytes=None):
    """x_sbh: (S, B, H), W: (H, H), b: (H,), v: (H,). Returns (B, H) float32.

    Pass x_sbh as bfloat16 on v6e/v7x to halve HBM traffic; accumulation stays f32.
    """
    S, B, H = x_sbh.shape
    itemsize = jnp.dtype(x_sbh.dtype).itemsize
    if vmem_limit_bytes is None:
        vmem_limit_bytes = _default_vmem_limit()

    # ---- batch tiling: sublane-aligned; >=2 tiles when worthwhile (v7x: 2 TCs).
    n_bt = pl.cdiv(B, block_b)
    if n_bt < 2 and B > 8:
        n_bt = 2
    tb = _round_up(pl.cdiv(B, n_bt), 8)
    n_bt = pl.cdiv(B, tb)
    Bp = n_bt * tb

    # ---- sequence tiling: bound the per-step x block so double-buffered x +
    #      f32 z + the per-tile temps + accumulators fit comfortably in VMEM.
    if block_s is None:
        x_block_budget = max(512 * 1024, vmem_limit_bytes // 8)
        block_s = max(1, x_block_budget // max(1, tb * H * itemsize))
    ts = min(block_s, S)
    if ts < S:
        ts = _round_up(ts, 8)        # keeps the (TS, 1) mask block legal
    n_st = pl.cdiv(S, ts)
    Sp = n_st * ts

    # ---- pad inputs (zeros). Padded batch rows are sliced off; padded sequence
    #      rows are excluded from the softmax via the additive mask.
    x_p = x_sbh
    if Bp != B or Sp != S:
        x_p = jnp.pad(x_sbh, ((0, Sp - S), (0, Bp - B), (0, 0)))
    seq_mask = jnp.where(jnp.arange(Sp) < S, 0.0, -jnp.inf)
    seq_mask = seq_mask.astype(jnp.float32).reshape(Sp, 1)

    wt = W.T.astype(x_sbh.dtype)               # tiny (H,H) transpose; matches x dtype for the MXU
    b2d = b.reshape(1, H).astype(jnp.float32)
    v_col = v.reshape(H, 1).astype(jnp.float32)

    cost = pl.CostEstimate(
        flops=int(2 * Sp * Bp * H * H + 2 * Sp * Bp * H + 6 * Sp * Bp * H),
        transcendentals=int(Sp * Bp * H + Sp * Bp + Bp),
        bytes_accessed=int(itemsize * Sp * Bp * H + 4 * Bp * H + 4 * H * H + 8 * H),
    )

    out = pl.pallas_call(
        _attention_kernel,
        out_shape=jax.ShapeDtypeStruct((Bp, H), jnp.float32),
        grid_spec=pltpu.PrefetchScalarGridSpec(
            num_scalar_prefetch=0,
            grid=(n_bt, n_st),                                   # (batch, seq-reduce)
            in_specs=[
                pl.BlockSpec((ts, tb, H), lambda i, j: (j, i, 0)),  # x: seq+batch tiled
                pl.BlockSpec((ts, 1), lambda i, j: (j, 0)),         # seq mask
                pl.BlockSpec((H, H), lambda i, j: (0, 0)),          # W^T: resident
                pl.BlockSpec((1, H), lambda i, j: (0, 0)),          # bias: resident
                pl.BlockSpec((H, 1), lambda i, j: (0, 0)),          # v: resident
            ],
            out_specs=pl.BlockSpec((tb, H), lambda i, j: (i, 0)),   # same block across j
            scratch_shapes=[
                pltpu.VMEM((tb, H), jnp.float32),   # sum_s score*x
                pltpu.VMEM((tb, H), jnp.float32),   # sum_s x
                pltpu.VMEM((tb, 1), jnp.float32),   # running max
                pltpu.VMEM((tb, 1), jnp.float32),   # running exp-sum
            ],
        ),
        compiler_params=pltpu.CompilerParams(
            dimension_semantics=("parallel", "arbitrary"),
            vmem_limit_bytes=int(vmem_limit_bytes),
        ),
        cost_estimate=cost,
    )(x_p, seq_mask, wt, b2d, v_col)

    return out[:B] if Bp != B else out


def my_attention_ref(x_sbh, W, b, v):
    """Pure-JAX mirror of the PyTorch forward, for verification."""
    z = jnp.tanh(jnp.einsum("sbh,kh->sbk", x_sbh, W) + b)    # Linear: x @ W^T + b
    z = jnp.transpose(z, (1, 0, 2))                          # (B, S, H)
    scores = jnp.einsum("bsh,h->bs", z, v)                   # (B, S)
    logp = jax.nn.log_softmax(scores, axis=1)                # (B, S)  (log-softmax, as in module)
    x_bsh = jnp.transpose(x_sbh, (1, 0, 2))
    return jnp.einsum("bs,bsh->bh", logp, x_bsh)             # (B, H)


if __name__ == "__main__":
    key = jax.random.PRNGKey(0)

    # --- primary check: module-sized toy shapes (seq=8, batch=2, hidden=32) ---
    S, B, H = 8, 2, 32
    kx, kw, kb, kv = jax.random.split(key, 4)
    x = jax.random.normal(kx, (S, B, H), dtype=jnp.float32)
    # NOTE: the PyTorch module's init_weights() zeros all parameters; use small
    # random values so the kernel computes something non-trivial.
    W = 0.1 * jax.random.normal(kw, (H, H), dtype=jnp.float32)   # attn_fn.weight
    bp = 0.1 * jax.random.normal(kb, (H,), dtype=jnp.float32)    # attn_fn.bias
    v = 0.1 * jax.random.normal(kv, (H,), dtype=jnp.float32)     # self.v

    out = jax.block_until_ready(my_attention_pallas(x, W, bp, v))
    ref = my_attention_ref(x, W, bp, v)
    assert out.shape == (B, H), out.shape
    assert jnp.allclose(out, ref, atol=1e-5, rtol=1e-5), (
        f"max abs diff {float(jnp.max(jnp.abs(out - ref)))}"
    )

    # --- secondary check: batch grid (3 tiles, padded) x S-reduction grid (2) ---
    S2, B2, H2 = 16, 20, 32
    kx2, kw2, kb2, kv2 = jax.random.split(jax.random.PRNGKey(1), 4)
    x2 = jax.random.normal(kx2, (S2, B2, H2), dtype=jnp.float32)
    W2 = 0.1 * jax.random.normal(kw2, (H2, H2), dtype=jnp.float32)
    b2 = 0.1 * jax.random.normal(kb2, (H2,), dtype=jnp.float32)
    v2 = 0.1 * jax.random.normal(kv2, (H2,), dtype=jnp.float32)
    out2 = jax.block_until_ready(
        my_attention_pallas(x2, W2, b2, v2, block_b=8, block_s=8)
    )
    ref2 = my_attention_ref(x2, W2, b2, v2)
    assert out2.shape == (B2, H2), out2.shape
    assert jnp.allclose(out2, ref2, atol=1e-5, rtol=1e-5), (
        f"max abs diff {float(jnp.max(jnp.abs(out2 - ref2)))}"
    )

    # --- tertiary check: S not a multiple of the S tile (masked padded rows) ---
    S3, B3, H3 = 13, 5, 32
    kx3, kw3, kb3, kv3 = jax.random.split(jax.random.PRNGKey(2), 4)
    x3 = jax.random.normal(kx3, (S3, B3, H3), dtype=jnp.float32)
    W3 = 0.1 * jax.random.normal(kw3, (H3, H3), dtype=jnp.float32)
    b3 = 0.1 * jax.random.normal(kb3, (H3,), dtype=jnp.float32)
    v3 = 0.1 * jax.random.normal(kv3, (H3,), dtype=jnp.float32)
    out3 = jax.block_until_ready(my_attention_pallas(x3, W3, b3, v3, block_s=8))
    ref3 = my_attention_ref(x3, W3, b3, v3)
    assert out3.shape == (B3, H3), out3.shape
    assert jnp.allclose(out3, ref3, atol=1e-5, rtol=1e-5), (
        f"max abs diff {float(jnp.max(jnp.abs(out3 - ref3)))}"
    )

    print("KERNEL_OK")
</pallas_src>

<mosaic_0001>
module attributes {stable_mosaic.version = 11 : i64} {
  func.func @_attention_kernel(%arg0: i32, %arg1: i32, %arg2: memref<8x8x32xf32, #tpu.memory_space<vmem>>, %arg3: memref<8x1xf32, #tpu.memory_space<vmem>>, %arg4: memref<32x32xf32, #tpu.memory_space<vmem>>, %arg5: memref<1x32xf32, #tpu.memory_space<vmem>>, %arg6: memref<32x1xf32, #tpu.memory_space<vmem>>, %arg7: memref<8x32xf32, #tpu.memory_space<vmem>>, %arg8: memref<8x32xf32, #tpu.memory_space<vmem>>, %arg9: memref<8x32xf32, #tpu.memory_space<vmem>>, %arg10: memref<8x1xf32, #tpu.memory_space<vmem>>, %arg11: memref<8x1xf32, #tpu.memory_space<vmem>>) attributes {dimension_semantics = [#tpu.dimension_semantics<parallel>, #tpu.dimension_semantics<arbitrary>], iteration_bounds = array<i64: 1, 1>, scalar_prefetch = 0 : i64, scratch_operands = 4 : i64, tpu.core_type = #tpu.core_type<tc>, window_params = [{transform_indices = @transform_0, window_bounds = array<i64: 8, 8, 32>}, {transform_indices = @transform_1, window_bounds = array<i64: 8, 1>}, {pipeline_mode = #tpu.pipeline_mode<synchronous>, transform_indices = @transform_2, window_bounds = array<i64: 32, 32>}, {pipeline_mode = #tpu.pipeline_mode<synchronous>, transform_indices = @transform_3, window_bounds = array<i64: 1, 32>}, {pipeline_mode = #tpu.pipeline_mode<synchronous>, transform_indices = @transform_4, window_bounds = array<i64: 32, 1>}, {transform_indices = @transform_5, window_bounds = array<i64: 8, 32>}]} {
    %c0_i32 = arith.constant 0 : i32
    %0 = arith.cmpi eq, %arg1, %c0_i32 : i32
    %1 = arith.extui %0 : i1 to i32
    %c0_i32_0 = arith.constant 0 : i32
    %2 = arith.cmpi ne, %1, %c0_i32_0 : i32
    scf.if %2 {
      %cst_34 = arith.constant 0.000000e+00 : f32
      %46 = vector.broadcast %cst_34 : f32 to vector<8x32xf32>
      %c0_35 = arith.constant 0 : index
      %c0_36 = arith.constant 0 : index
      %47 = vector.load %arg8[%c0_35, %c0_36] : memref<8x32xf32, #tpu.memory_space<vmem>>, vector<8x32xf32>
      tpu.vector_store %arg8[%c0_35, %c0_36], %46 {strides = array<i32>} : memref<8x32xf32, #tpu.memory_space<vmem>>, vector<8x32xf32>,
      %cst_37 = arith.constant 0.000000e+00 : f32
      %48 = vector.broadcast %cst_37 : f32 to vector<8x32xf32>
      %c0_38 = arith.constant 0 : index
      %c0_39 = arith.constant 0 : index
      %49 = vector.load %arg9[%c0_38, %c0_39] : memref<8x32xf32, #tpu.memory_space<vmem>>, vector<8x32xf32>
      tpu.vector_store %arg9[%c0_38, %c0_39], %48 {strides = array<i32>} : memref<8x32xf32, #tpu.memory_space<vmem>>, vector<8x32xf32>,
      %cst_40 = arith.constant 0xFF800000 : f32
      %50 = vector.broadcast %cst_40 : f32 to vector<8x1xf32>
      %c0_41 = arith.constant 0 : index
      %c0_42 = arith.constant 0 : index
      %51 = vector.load %arg10[%c0_41, %c0_42] : memref<8x1xf32, #tpu.memory_space<vmem>>, vector<8x1xf32>
      tpu.vector_store %arg10[%c0_41, %c0_42], %50 {strides = array<i32>} : memref<8x1xf32, #tpu.memory_space<vmem>>, vector<8x1xf32>,
      %cst_43 = arith.constant 0.000000e+00 : f32
      %52 = vector.broadcast %cst_43 : f32 to vector<8x1xf32>
      %c0_44 = arith.constant 0 : index
      %c0_45 = arith.constant 0 : index
      %53 = vector.load %arg11[%c0_44, %c0_45] : memref<8x1xf32, #tpu.memory_space<vmem>>, vector<8x1xf32>
      tpu.vector_store %arg11[%c0_44, %c0_45], %52 {strides = array<i32>} : memref<8x1xf32, #tpu.memory_space<vmem>>, vector<8x1xf32>,
    } else {
    }
    %c0 = arith.constant 0 : index
    %c0_1 = arith.constant 0 : index
    %c0_2 = arith.constant 0 : index
    %3 = vector.load %arg2[%c0, %c0_1, %c0_2] : memref<8x8x32xf32, #tpu.memory_space<vmem>>, vector<8x8x32xf32>
    %4 = vector.shape_cast %3 : vector<8x8x32xf32> to vector<64x32xf32>
    %c0_3 = arith.constant 0 : index
    %c0_4 = arith.constant 0 : index
    %5 = vector.load %arg4[%c0_3, %c0_4] : memref<32x32xf32, #tpu.memory_space<vmem>>, vector<32x32xf32>
    %cst = arith.constant dense<0.000000e+00> : vector<64x32xf32>
    %6 = tpu.matmul %4, %5, %cst {dimension_numbers = #tpu.dot_dimension_numbers<[1], [0], [0], [1], [0, 0, 1, 1], [], []>} : vector<64x32xf32>, vector<32x32xf32>, vector<64x32xf32> -> vector<64x32xf32>
    %c0_5 = arith.constant 0 : index
    %c0_6 = arith.constant 0 : index
    %7 = vector.load %arg5[%c0_5, %c0_6] : memref<1x32xf32, #tpu.memory_space<vmem>>, vector<1x32xf32>
    %8 = vector.broadcast %7 : vector<1x32xf32> to vector<64x32xf32>
    %9 = arith.addf %6, %8 : vector<64x32xf32>
    %10 = math.tanh %9 : vector<64x32xf32>
    %c0_7 = arith.constant 0 : index
    %c0_8 = arith.constant 0 : index
    %11 = vector.load %arg6[%c0_7, %c0_8] : memref<32x1xf32, #tpu.memory_space<vmem>>, vector<32x1xf32>
    %cst_9 = arith.constant dense<0.000000e+00> : vector<64x1xf32>
    %12 = tpu.matmul %10, %11, %cst_9 {dimension_numbers = #tpu.dot_dimension_numbers<[1], [0], [0], [1], [0, 0, 1, 1], [], []>} : vector<64x32xf32>, vector<32x1xf32>, vector<64x1xf32> -> vector<64x1xf32>
    %13 = vector.shape_cast %12 : vector<64x1xf32> to vector<8x8x1xf32>
    %c0_10 = arith.constant 0 : index
    %c0_11 = arith.constant 0 : index
    %14 = vector.load %arg3[%c0_10, %c0_11] : memref<8x1xf32, #tpu.memory_space<vmem>>, vector<8x1xf32>
    %15 = vector.shape_cast %14 : vector<8x1xf32> to vector<8x1x1xf32>
    %16 = vector.broadcast %15 : vector<8x1x1xf32> to vector<8x8x1xf32>
    %17 = arith.addf %13, %16 : vector<8x8x1xf32>
    %c0_12 = arith.constant 0 : index
    %c0_13 = arith.constant 0 : index
    %18 = vector.load %arg10[%c0_12, %c0_13] : memref<8x1xf32, #tpu.memory_space<vmem>>, vector<8x1xf32>
    %cst_14 = arith.constant dense<0xFF800000> : vector<8x1xf32>
    %19 = vector.multi_reduction <maximumf>, %17, %cst_14 [0] : vector<8x8x1xf32> to vector<8x1xf32>
    %20 = arith.maximumf %18, %19 : vector<8x1xf32>
    %21 = arith.subf %18, %20 : vector<8x1xf32>
    %22 = math.exp %21 : vector<8x1xf32>
    %c0_15 = arith.constant 0 : index
    %c0_16 = arith.constant 0 : index
    %23 = vector.load %arg11[%c0_15, %c0_16] : memref<8x1xf32, #tpu.memory_space<vmem>>, vector<8x1xf32>
    %24 = arith.mulf %23, %22 : vector<8x1xf32>
    %25 = vector.shape_cast %20 : vector<8x1xf32> to vector<1x8x1xf32>
    %26 = vector.broadcast %25 : vector<1x8x1xf32> to vector<8x8x1xf32>
    %27 = arith.subf %17, %26 : vector<8x8x1xf32>
    %28 = math.exp %27 : vector<8x8x1xf32>
    %cst_17 = arith.constant dense<0.000000e+00> : vector<8x1xf32>
    %29 = vector.multi_reduction <add>, %28, %cst_17 [0] : vector<8x8x1xf32> to vector<8x1xf32>
    %30 = arith.addf %24, %29 : vector<8x1xf32>
    %c0_18 = arith.constant 0 : index
    %c0_19 = arith.constant 0 : index
    %31 = vector.load %arg11[%c0_18, %c0_19] : memref<8x1xf32, #tpu.memory_space<vmem>>, vector<8x1xf32>
    tpu.vector_store %arg11[%c0_18, %c0_19], %30 {strides = array<i32>} : memref<8x1xf32, #tpu.memory_space<vmem>>, vector<8x1xf32>,
    %c0_20 = arith.constant 0 : index
    %c0_21 = arith.constant 0 : index
    %32 = vector.load %arg10[%c0_20, %c0_21] : memref<8x1xf32, #tpu.memory_space<vmem>>, vector<8x1xf32>
    tpu.vector_store %arg10[%c0_20, %c0_21], %20 {strides = array<i32>} : memref<8x1xf32, #tpu.memory_space<vmem>>, vector<8x1xf32>,
    %c0_22 = arith.constant 0 : index
    %c0_23 = arith.constant 0 : index
    %33 = vector.load %arg8[%c0_22, %c0_23] : memref<8x32xf32, #tpu.memory_space<vmem>>, vector<8x32xf32>
    %34 = vector.broadcast %13 : vector<8x8x1xf32> to vector<8x8x32xf32>
    %35 = arith.mulf %34, %3 : vector<8x8x32xf32>
    %cst_24 = arith.constant dense<0.000000e+00> : vector<8x32xf32>
    %36 = vector.multi_reduction <add>, %35, %cst_24 [0] : vector<8x8x32xf32> to vector<8x32xf32>
    %37 = arith.addf %33, %36 : vector<8x32xf32>
    %c0_25 = arith.constant 0 : index
    %c0_26 = arith.constant 0 : index
    %38 = vector.load %arg8[%c0_25, %c0_26] : memref<8x32xf32, #tpu.memory_space<vmem>>, vector<8x32xf32>
    tpu.vector_store %arg8[%c0_25, %c0_26], %37 {strides = array<i32>} : memref<8x32xf32, #tpu.memory_space<vmem>>, vector<8x32xf32>,
    %c0_27 = arith.constant 0 : index
    %c0_28 = arith.constant 0 : index
    %39 = vector.load %arg9[%c0_27, %c0_28] : memref<8x32xf32, #tpu.memory_space<vmem>>, vector<8x32xf32>
    %cst_29 = arith.constant dense<0.000000e+00> : vector<8x32xf32>
    %40 = vector.multi_reduction <add>, %3, %cst_29 [0] : vector<8x8x32xf32> to vector<8x32xf32>
    %41 = arith.addf %39, %40 : vector<8x32xf32>
    %c0_30 = arith.constant 0 : index
    %c0_31 = arith.constant 0 : index
    %42 = vector.load %arg9[%c0_30, %c0_31] : memref<8x32xf32, #tpu.memory_space<vmem>>, vector<8x32xf32>
    tpu.vector_store %arg9[%c0_30, %c0_31], %41 {strides = array<i32>} : memref<8x32xf32, #tpu.memory_space<vmem>>, vector<8x32xf32>,
    %c0_i32_32 = arith.constant 0 : i32
    %43 = arith.cmpi eq, %arg1, %c0_i32_32 : i32
    %44 = arith.extui %43 : i1 to i32
    %c0_i32_33 = arith.constant 0 : i32
    %45 = arith.cmpi ne, %44, %c0_i32_33 : i32
    scf.if %45 {
      %c0_34 = arith.constant 0 : index
      %c0_35 = arith.constant 0 : index
      %46 = vector.load %arg10[%c0_34, %c0_35] : memref<8x1xf32, #tpu.memory_space<vmem>>, vector<8x1xf32>
      %c0_36 = arith.constant 0 : index
      %c0_37 = arith.constant 0 : index
      %47 = vector.load %arg11[%c0_36, %c0_37] : memref<8x1xf32, #tpu.memory_space<vmem>>, vector<8x1xf32>
      %48 = math.log %47 : vector<8x1xf32>
      %49 = arith.addf %46, %48 : vector<8x1xf32>
      %c0_38 = arith.constant 0 : index
      %c0_39 = arith.constant 0 : index
      %50 = vector.load %arg8[%c0_38, %c0_39] : memref<8x32xf32, #tpu.memory_space<vmem>>, vector<8x32xf32>
      %c0_40 = arith.constant 0 : index
      %c0_41 = arith.constant 0 : index
      %51 = vector.load %arg9[%c0_40, %c0_41] : memref<8x32xf32, #tpu.memory_space<vmem>>, vector<8x32xf32>
      %52 = vector.broadcast %49 : vector<8x1xf32> to vector<8x32xf32>
      %53 = arith.mulf %52, %51 : vector<8x32xf32>
      %54 = arith.subf %50, %53 : vector<8x32xf32>
      %c0_42 = arith.constant 0 : index
      %c0_43 = arith.constant 0 : index
      %55 = vector.load %arg7[%c0_42, %c0_43] : memref<8x32xf32, #tpu.memory_space<vmem>>, vector<8x32xf32>
      tpu.vector_store %arg7[%c0_42, %c0_43], %54 {strides = array<i32>} : memref<8x32xf32, #tpu.memory_space<vmem>>, vector<8x32xf32>,
    } else {
    }
    return
  }
  func.func @transform_0(%arg0: i32, %arg1: i32) -> (i32, i32, i32) {
    %c0_i32 = arith.constant 0 : i32
    %c0_i32_0 = arith.constant 0 : i32
    return %arg1, %arg0, %c0_i32 : i32, i32, i32
  }
  func.func @transform_1(%arg0: i32, %arg1: i32) -> (i32, i32) {
    %c0_i32 = arith.constant 0 : i32
    %c0_i32_0 = arith.constant 0 : i32
    return %arg1, %c0_i32 : i32, i32
  }
  func.func @transform_2(%arg0: i32, %arg1: i32) -> (i32, i32) {
    %c0_i32 = arith.constant 0 : i32
    %c0_i32_0 = arith.constant 0 : i32
    %c0_i32_1 = arith.constant 0 : i32
    return %c0_i32, %c0_i32_0 : i32, i32
  }
  func.func @transform_3(%arg0: i32, %arg1: i32) -> (i32, i32) {
    %c0_i32 = arith.constant 0 : i32
    %c0_i32_0 = arith.constant 0 : i32
    %c0_i32_1 = arith.constant 0 : i32
    return %c0_i32, %c0_i32_0 : i32, i32
  }
  func.func @transform_4(%arg0: i32, %arg1: i32) -> (i32, i32) {
    %c0_i32 = arith.constant 0 : i32
    %c0_i32_0 = arith.constant 0 : i32
    %c0_i32_1 = arith.constant 0 : i32
    return %c0_i32, %c0_i32_0 : i32, i32
  }
  func.func @transform_5(%arg0: i32, %arg1: i32) -> (i32, i32) {
    %c0_i32 = arith.constant 0 : i32
    %c0_i32_0 = arith.constant 0 : i32
    return %arg0, %c0_i32 : i32, i32
  }
}

</mosaic_0001>

<bundles_post_ra>
// kernel: tpu_custom_call.1
= control target key start
LH: loop header
LB: loop body
LE: loop exit
PB: predicated region body
PF: predicated region fallthrough
CT: control target
= control target key end

     0   :  { %10 = vsyncpa [#allocation7], 0  ;;  %s716_s0 = inlined_call_operand.hbm [shape: f32[8,8,32], index: 0, kind: input, shape index: {}]   ;;  %s717_s1 = inlined_call_operand.vmem [shape: f32[8,1], index: 1, kind: input, shape index: {}]   ;;  %s718_s2 = inlined_call_operand.vmem [shape: f32[32,32], index: 2, kind: input, shape index: {}]   ;;  %s719_s3 = inlined_call_operand.vmem [shape: f32[1,32], index: 3, kind: input, shape index: {}]   ;;  %s720_s4 = inlined_call_operand.vmem [shape: f32[32,1], index: 4, kind: input, shape index: {}]   ;;  %s721_s5 = inlined_call_operand.hbm [shape: f32[8,32], index: 5, kind: output, shape index: {}]  }
   0x1   :  { %11 = vsyncpa [#allocation8], 0  ;;  %s16_s20 = sshll.u32 %s716_s0, 4  ;;  %s546_s21 = smov [#allocation6]   ;;  %s17_s20 = int_to_ptr.hbm [resolvable:$true] %s16_s20 }
   0x2   :  { %s18_s22 = sshll.u32 %s546_s21, 4  ;;  %s547_s23 = smov 128   ;;  %s19_s22 = int_to_ptr.vmem [resolvable:$true] %s18_s22 }
   0x3   :  { %s548_s24 = smov 8  }
   0x4   :  { %24 = dma.hbm_to_vmem [thread:$0]  %s17_s20, 1024, %s19_s22, [#allocation7], %s547_s23, %s547_s23, %s548_s24  }
   0x5   :  { %542 = dma.done.wait [#allocation7], 1024  }
   0x6   :  { %543 = vsyncadd [#allocation7], 4294966272  ;;  %v58_v0 = vld [vmem:[%s718_s2 + $0x18] sm:$0xff]  ;;  %v57_v1 = vld [vmem:[%s718_s2 + $0x10] sm:$0xff]  ;;  %vm41_vm0 = vcmask 261120   ;;  %v549_v3 = vmov 0.0  }
   0x7   :  { %100 = vmatpush.msra.mxu0 %v58_v0  ;;  %439 = vmatpush.msra.mxu2 %v58_v0  ;;  %v592_v2 = vld [vmem:[#allocation6] sm:$0xff]  ;;  %43 = vst.msk [vmem:[#allocation3] sm:$0xff] %vm41_vm0, %v549_v3  ;;  %vm44_vm1 = vcmask 7168   ;;  %v56_v4 = vld [vmem:[%s718_s2 + $0x8] sm:$0xff]  ;;  %v602_v7 = vld [vmem:[#allocation6 + $0x10] sm:$0xff]  ;;  %v550_v59 = vmov 0  }
   0x8   :  { %v371_v5 = vsel %vm41_vm0, %v592_v2, 0.0  ;;  %v600_v6 = vld [vmem:[#allocation6 + $0x8] sm:$0xff]  ;;  %46 = vst.msk [vmem:[#allocation5] sm:$0xff] %vm44_vm1, %v549_v3  ;;  %v374_v9 = vsel %vm41_vm0, %v602_v7, 0.0  ;;  %v55_v10 = vld [vmem:[%s718_s2] sm:$0xff]  ;;  %v612_v12 = vld [vmem:[#allocation6 + $0x18] sm:$0xff]  ;;  %454 = vset.pattern.permute.xlu0 %v550_v59  ;;  %455 = vset.pattern.permute.xlu2 %v550_v59 }
   0x9   :  { %101 = vmatpush.msra.mxu0 %v57_v1  ;;  %440 = vmatpush.msra.mxu2 %v57_v1  ;;  %v372_v8 = vsel %vm41_vm0, %v600_v6, 0.0  ;;  %42 = vst.msk [vmem:[#allocation2] sm:$0xff] %vm41_vm0, %v549_v3  ;;  %v615_v13 = vld [vmem:[#allocation6 + $0x20] sm:$0xff]  ;;  %v376_v14 = vsel %vm41_vm0, %v612_v12, 0.0  ;;  %v625_v17 = vld [vmem:[#allocation6 + $0x28] sm:$0xff]  ;;  %v629_v20 = vld [vmem:[#allocation6 + $0x30] sm:$0xff] }
   0xa   :  { %v373_v11 = vadd.f32 %v372_v8, %v371_v5  ;;  %v378_v16 = vsel %vm41_vm0, %v615_v13, 0.0  ;;  %v380_v19 = vsel %vm41_vm0, %v625_v17, 0.0  ;;  %v382_v22 = vsel %vm41_vm0, %v629_v20, 0.0  ;;  %v633_v23 = vld [vmem:[#allocation6 + $0x38] sm:$0xff]  ;;  %v139_v31 = vld [vmem:[%s720_s4 + $0x10] sm:$0xff]  ;;  %v138_v32 = vld [vmem:[%s720_s4 + $0x8] sm:$0xff]  ;;  %456 = vset.pattern.permute.xlu1 %v550_v59 }
   0xb   :  { %102 = vmatpush.msra.mxu0 %v56_v4  ;;  %441 = vmatpush.msra.mxu2 %v56_v4  ;;  %v384_v25 = vsel %vm41_vm0, %v633_v23, 0.0  ;;  %v140_v30 = vld [vmem:[%s720_s4 + $0x18] sm:$0xff]  ;;  %v137_v33 = vld [vmem:[%s720_s4] sm:$0xff]  ;;  %v551_v61 = vmov -inf   ;;  %s413_s19 = sshll.u32 %s721_s5, 4  ;;  %s414_s19 = int_to_ptr.hbm [resolvable:$true] %s413_s19 }
   0xc   :  { %v375_v15 = vadd.f32 %v374_v9, %v373_v11  ;;  %177 = vmatpush.msra.mxu1 %v140_v30  ;;  %443 = vmatpush.msra.mxu3 %v140_v30  ;;  %v457_v34 = vld [vmem:[%s719_s3] ss:$0 sm:$0xff]  ;;  %45 = vst.msk [vmem:[#allocation4] sm:$0xff] %vm44_vm1, %v551_v61 }
   0xd   :  { %103 = vmatpush.msra.mxu0 %v55_v10  ;;  %442 = vmatpush.msra.mxu2 %v55_v10  ;;  %v206_v3 = vld [vmem:[%s717_s1] sm:$0xff]  ;;  %s552_s1 = smov [#allocation9]  }
   0xe   :  { %423 = vmatmul.msk.f32.vlgmr.msra.gmra.mxu0 %vm41_vm0, %v592_v2  ;;  %427 = vmatmul.msk.f32.vlgmr.msra.gmra.mxu2 %vm41_vm0, %v615_v13  ;;  %v377_v18 = vadd.f32 %v376_v14, %v375_v15  ;;  %v370_v27 = vld [vmem:[#allocation3] sm:$0xff]  ;;  %v208_v4 = vrot.slane %v206_v3, 1  ;;  %v212_v5 = vrot.slane %v206_v3, 5  ;;  %v211_v8 = vrot.slane %v206_v3, 4  ;;  %s411_s16 = sshll.u32 %s552_s1, 4  ;;  %s412_s16 = int_to_ptr.vmem [resolvable:$true] %s411_s16 }
   0xf   :  { %178 = vmatpush.msra.mxu1 %v139_v31  ;;  %444 = vmatpush.msra.mxu3 %v139_v31  ;;  %v209_v10 = vrot.slane %v206_v3, 2  ;;  %v210_v11 = vrot.slane %v206_v3, 3  ;;  %v213_v14 = vrot.slane %v206_v3, 6 }
  0x10   :  { %v379_v21 = vadd.f32 %v378_v16, %v377_v18  ;;  %v216_v15 = vperm.slane %v208_v4, 0  ;;  %v220_v16 = vperm.slane %v212_v5, 0  ;;  %v215_v18 = vperm.slane %v206_v3, 0 }
  0x11   :  { %179 = vmatpush.msra.mxu1 %v138_v32  ;;  %445 = vmatpush.msra.mxu3 %v138_v32 }
  0x12   :  { %v381_v24 = vadd.f32 %v380_v19, %v379_v21  ;;  %v219_v19 = vperm.slane %v211_v8, 0 }
  0x13   :  { %180 = vmatpush.msra.mxu1 %v137_v33  ;;  %446 = vmatpush.msra.mxu3 %v137_v33 }
  0x14   :  { %v383_v26 = vadd.f32 %v382_v22, %v381_v24  ;;  %v217_v22 = vperm.slane %v209_v10, 0  ;;  %v218_v24 = vperm.slane %v210_v11, 0 }
  0x16   :  { %424 = vmatmul.msk.f32.gmra.mxu0 %vm41_vm0, %v600_v6  ;;  %428 = vmatmul.msk.f32.gmra.mxu2 %vm41_vm0, %v625_v17  ;;  %v385_v28 = vadd.f32 %v384_v25, %v383_v26  ;;  %v221_v25 = vperm.slane %v213_v14, 0  ;;  %v214_v26 = vrot.slane %v206_v3, 7 }
  0x18   :  { %v386_v29 = vadd.f32 %v385_v28, %v370_v27 }
  0x1a   :  { %387 = vst.msk [vmem:[#allocation3] sm:$0xff] %vm41_vm0, %v386_v29 }
  0x1e   :  { %425 = vmatmul.msk.f32.gmra.mxu0 %vm41_vm0, %v602_v7  ;;  %429 = vmatmul.msk.f32.gmra.mxu2 %vm41_vm0, %v629_v20 }
  0x26   :  { %426 = vmatmul.msk.f32.gmra.mxu0 %vm41_vm0, %v612_v12  ;;  %430 = vmatmul.msk.f32.gmra.mxu2 %vm41_vm0, %v633_v23 }
  0x8b   :  { %v105_v35 = vpop.f32.mrf.mxu0 }
  0x8c   :  { %v106_v36 = vadd.f32 %v457_v34, %v105_v35 }
  0x8e   :  { %458 = vtanh.f32 %v106_v36 }
  0x91   :  { %v117_v37 = vpop.f32.mrf.mxu2 }
  0x92   :  { %v118_v38 = vadd.f32 %v457_v34, %v117_v37 }
  0x93   :  { %v108_v39 = vpop.f32.mrf.mxu0 }
  0x94   :  { %v459_v40 = vpop.eup %458  ;;  %460 = vtanh.f32 %v118_v38  ;;  %v109_v41 = vadd.f32 %v457_v34, %v108_v39 }
  0x95   :  { %431 = vmatmul.msk.f32.vlgmr.msra.gmra.mxu1 %vm41_vm0, %v459_v40 }
  0x96   :  { %462 = vtanh.f32 %v109_v41 }
  0x99   :  { %v120_v42 = vpop.f32.mrf.mxu2 }
  0x9a   :  { %v461_v43 = vpop.eup %460  ;;  %v121_v44 = vadd.f32 %v457_v34, %v120_v42 }
  0x9b   :  { %v111_v45 = vpop.f32.mrf.mxu0  ;;  %435 = vmatmul.msk.f32.vlgmr.msra.gmra.mxu3 %vm41_vm0, %v461_v43 }
  0x9c   :  { %v463_v46 = vpop.eup %462  ;;  %464 = vtanh.f32 %v121_v44  ;;  %v112_v47 = vadd.f32 %v457_v34, %v111_v45 }
  0x9d   :  { %432 = vmatmul.msk.f32.gmra.mxu1 %vm41_vm0, %v463_v46 }
  0x9e   :  { %466 = vtanh.f32 %v112_v47 }
  0xa1   :  { %v123_v48 = vpop.f32.mrf.mxu2 }
  0xa2   :  { %v465_v49 = vpop.eup %464  ;;  %v124_v50 = vadd.f32 %v457_v34, %v123_v48 }
  0xa3   :  { %v114_v51 = vpop.f32.mrf.mxu0  ;;  %436 = vmatmul.msk.f32.gmra.mxu3 %vm41_vm0, %v465_v49 }
  0xa4   :  { %v467_v52 = vpop.eup %466  ;;  %468 = vtanh.f32 %v124_v50  ;;  %v115_v53 = vadd.f32 %v457_v34, %v114_v51  ;;  %v239_v51 = vld [vmem:[#allocation4] sm:$0xff] }
  0xa5   :  { %433 = vmatmul.msk.f32.gmra.mxu1 %vm41_vm0, %v467_v52 }
  0xa6   :  { %470 = vtanh.f32 %v115_v53 }
  0xa9   :  { %v126_v54 = vpop.f32.mrf.mxu2 }
  0xaa   :  { %v469_v55 = vpop.eup %468  ;;  %v127_v56 = vadd.f32 %v457_v34, %v126_v54  ;;  %v222_v34 = vperm.slane %v214_v26, 0 }
  0xab   :  { %437 = vmatmul.msk.f32.gmra.mxu3 %vm41_vm0, %v469_v55 }
  0xac   :  { %v471_v57 = vpop.eup %470  ;;  %472 = vtanh.f32 %v127_v56 }
  0xad   :  { %434 = vmatmul.msk.f32.gmra.mxu1 %vm41_vm0, %v471_v57 }
  0xb2   :  { %v473_v58 = vpop.eup %472 }
  0xb3   :  { %438 = vmatmul.msk.f32.gmra.mxu3 %vm41_vm0, %v473_v58 }
 0x112   :  { %v182_v60 = vpop.f32.mrf.mxu1 }
 0x113   :  { %307 = vperm.xlu0 %454, %v182_v60   ;;  %v231_v29 = vadd.f32 %v215_v18, %v182_v60 }
 0x115   :  { %v241_v37 = vsel %vm44_vm1, %v231_v29, -inf }
 0x11a   :  { %v185_v62 = vpop.f32.mrf.mxu1 }
 0x11b   :  { %312 = vperm.xlu0 %454, %v185_v62   ;;  %v232_v27 = vadd.f32 %v216_v15, %v185_v62 }
 0x11d   :  { %v242_v35 = vsel %vm44_vm1, %v232_v27, -inf }
 0x11e   :  { %v194_v63 = vpop.f32.mrf.mxu3 }
 0x11f   :  { %327 = vperm.xlu2 %455, %v194_v63   ;;  %v235_v30 = vadd.f32 %v219_v19, %v194_v63 }
 0x121   :  { %v245_v38 = vsel %vm44_vm1, %v235_v30, -inf }
 0x122   :  { %v188_v0 = vpop.f32.mrf.mxu1  ;;  %v246_v46 = vmax.f32 %v241_v37, %v245_v38 }
 0x123   :  { %317 = vperm.xlu1 %456, %v188_v0   ;;  %v233_v31 = vadd.f32 %v217_v22, %v188_v0 }
 0x125   :  { %v243_v40 = vsel %vm44_vm1, %v233_v31, -inf }
 0x126   :  { %v197_v1 = vpop.f32.mrf.mxu3 }
 0x127   :  { %332 = vperm.xlu2 %455, %v197_v1   ;;  %v236_v28 = vadd.f32 %v220_v16, %v197_v1 }
 0x129   :  { %v247_v36 = vsel %vm44_vm1, %v236_v28, -inf }
 0x12a   :  { %v191_v9 = vpop.f32.mrf.mxu1  ;;  %v248_v44 = vmax.f32 %v242_v35, %v247_v36  ;;  %v260_v36 = vld [vmem:[#allocation5] sm:$0xff] }
 0x12b   :  { %322 = vperm.xlu1 %456, %v191_v9   ;;  %v234_v32 = vadd.f32 %v218_v24, %v191_v9 }
 0x12c   :  { %v253_v49 = vmax.f32 %v246_v46, %v248_v44 }
 0x12d   :  { %v244_v41 = vsel %vm44_vm1, %v234_v32, -inf }
 0x12e   :  { %v200_v21 = vpop.f32.mrf.mxu3 }
 0x12f   :  { %337 = vperm.xlu0 %454, %v200_v21   ;;  %v237_v33 = vadd.f32 %v221_v25, %v200_v21 }
 0x131   :  { %v249_v42 = vsel %vm44_vm1, %v237_v33, -inf }
 0x132   :  { %v250_v47 = vmax.f32 %v243_v40, %v249_v42 }
 0x136   :  { %v203_v39 = vpop.f32.mrf.mxu3 }
 0x137   :  { %v238_v43 = vadd.f32 %v222_v34, %v203_v39  ;;  %342 = vperm.xlu1 %456, %v203_v39  }
 0x139   :  { %v251_v45 = vsel %vm44_vm1, %v238_v43, -inf }
 0x13a   :  { %v252_v48 = vmax.f32 %v244_v41, %v251_v45 }
 0x13c   :  { %v254_v50 = vmax.f32 %v250_v47, %v252_v48 }
 0x13e   :  { %v255_v52 = vmax.f32 %v253_v49, %v254_v50 }
 0x140   :  { %v256_v53 = vmax.f32 %v239_v51, %v255_v52 }
 0x142   :  { %v262_v54 = vsub.f32 %v231_v29, %v256_v53  ;;  %v263_v55 = vsub.f32 %v232_v27, %v256_v53  ;;  %v264_v56 = vsub.f32 %v233_v31, %v256_v53  ;;  %303 = vst.msk [vmem:[#allocation4] sm:$0xff] %vm44_vm1, %v256_v53  ;;  %v265_v57 = vsub.f32 %v234_v32, %v256_v53 }
 0x143   :  { %v266_v58 = vsub.f32 %v235_v30, %v256_v53  ;;  %v267_v62 = vsub.f32 %v236_v28, %v256_v53  ;;  %v268_v0 = vsub.f32 %v237_v33, %v256_v53  ;;  %v269_v3 = vsub.f32 %v238_v43, %v256_v53 }
 0x144   :  { %v270_v59 = vmul.f32 1.442695, %v262_v54  ;;  %v272_v60 = vmul.f32 1.442695, %v263_v55  ;;  %v274_v61 = vmul.f32 1.442695, %v264_v56  ;;  %v257_v5 = vsub.f32 %v239_v51, %v256_v53 }
 0x145   :  { %v276_v63 = vmul.f32 1.442695, %v265_v57  ;;  %v278_v1 = vmul.f32 1.442695, %v266_v58  ;;  %v280_v4 = vmul.f32 1.442695, %v267_v62 }
 0x146   :  { %474 = vpow2.f32 %v270_v59  ;;  %v282_v8 = vmul.f32 1.442695, %v268_v0  ;;  %v284_v11 = vmul.f32 1.442695, %v269_v3  ;;  %v258_v16 = vmul.f32 1.442695, %v257_v5 }
 0x147   :  { %476 = vpow2.f32 %v272_v60 }
 0x148   :  { %478 = vpow2.f32 %v274_v61 }
 0x149   :  { %480 = vpow2.f32 %v276_v63  ;;  %v391_v46 = vld [vmem:[#allocation4] sm:$0xff] }
 0x14a   :  { %482 = vpow2.f32 %v278_v1 }
 0x14b   :  { %484 = vpow2.f32 %v280_v4 }
 0x14c   :  { %v475_v9 = vpop.eup %474  ;;  %486 = vpow2.f32 %v282_v8 }
 0x14d   :  { %v477_v10 = vpop.eup %476  ;;  %v286_v14 = vsel %vm44_vm1, %v475_v9, 0.0  ;;  %488 = vpow2.f32 %v284_v11  ;;  %v304_v11 = vld [vmem:[#allocation2] sm:$0xff] }
 0x14e   :  { %v479_v15 = vpop.eup %478  ;;  %v287_v18 = vsel %vm44_vm1, %v477_v10, 0.0  ;;  %490 = vpow2.f32 %v258_v16 }
 0x14f   :  { %v481_v19 = vpop.eup %480  ;;  %v288_v21 = vadd.f32 %v287_v18, %v286_v14  ;;  %v289_v22 = vsel %vm44_vm1, %v479_v15, 0.0 }
 0x150   :  { %v483_v24 = vpop.eup %482  ;;  %v291_v26 = vsel %vm44_vm1, %v481_v19, 0.0 }
 0x151   :  { %v290_v25 = vadd.f32 %v289_v22, %v288_v21  ;;  %v485_v27 = vpop.eup %484  ;;  %v293_v29 = vsel %vm44_vm1, %v483_v24, 0.0 }
 0x152   :  { %v487_v30 = vpop.eup %486  ;;  %v295_v32 = vsel %vm44_vm1, %v485_v27, 0.0 }
 0x153   :  { %v292_v28 = vadd.f32 %v291_v26, %v290_v25  ;;  %v489_v33 = vpop.eup %488  ;;  %v297_v37 = vsel %vm44_vm1, %v487_v30, 0.0 }
 0x154   :  { %v491_v35 = vpop.eup %490  ;;  %v299_v39 = vsel %vm44_vm1, %v489_v33, 0.0 }
 0x155   :  { %v294_v31 = vadd.f32 %v293_v29, %v292_v28  ;;  %v261_v40 = vmul.f32 %v491_v35, %v260_v36 }
 0x157   :  { %v296_v34 = vadd.f32 %v295_v32, %v294_v31 }
 0x159   :  { %v298_v38 = vadd.f32 %v297_v37, %v296_v34 }
 0x15b   :  { %v300_v41 = vadd.f32 %v299_v39, %v298_v38 }
 0x15d   :  { %v301_v42 = vadd.f32 %v300_v41, %v261_v40 }
 0x15f   :  { %302 = vst.msk [vmem:[#allocation5] sm:$0xff] %vm44_vm1, %v301_v42 }
 0x166   :  { %v392_v43 = vld [vmem:[#allocation5] sm:$0xff] }
 0x167   :  { %492 = vlog2.f32 %v392_v43 }
 0x16d   :  { %v493_v44 = vpop.eup %492 }
 0x16e   :  { %v394_v45 = vmul.f32 0.6931472, %v493_v44 }
 0x170   :  { %v395_v47 = vadd.f32 %v394_v45, %v391_v46 }
 0x172   :  { %400 = vperm.xlu2 %455, %v395_v47  }
 0x179   :  { %v328_v50 = vpop.permute.xlu2 %327 }
 0x17a   :  { %v349_v60 = vmul.f32 %v328_v50, %v615_v13 }
 0x181   :  { %v333_v62 = vpop.permute.xlu2 %332 }
 0x185   :  { %v308_v48 = vpop.permute.xlu0 %307 }
 0x186   :  { %v345_v52 = vmul.f32 %v308_v48, %v592_v2 }
 0x188   :  { %v353_v55 = vsel %vm41_vm0, %v345_v52, 0.0 }
 0x18d   :  { %v313_v49 = vpop.permute.xlu0 %312 }
 0x18e   :  { %v346_v53 = vmul.f32 %v313_v49, %v600_v6  ;;  %v360_v6 = vsel %vm41_vm0, %v349_v60, 0.0 }
 0x190   :  { %v354_v56 = vsel %vm41_vm0, %v346_v53, 0.0 }
 0x191   :  { %v355_v58 = vadd.f32 %v354_v56, %v353_v55 }
 0x195   :  { %v318_v51 = vpop.permute.xlu1 %317 }
 0x196   :  { %v347_v54 = vmul.f32 %v318_v51, %v602_v7  ;;  %v350_v7 = vmul.f32 %v333_v62, %v625_v17  ;;  %v397_v17 = vld [vmem:[#allocation3] sm:$0xff] }
 0x198   :  { %v356_v57 = vsel %vm41_vm0, %v347_v54, 0.0  ;;  %v362_v4 = vsel %vm41_vm0, %v350_v7, 0.0 }
 0x199   :  { %v357_v63 = vadd.f32 %v356_v57, %v355_v58 }
 0x19d   :  { %v323_v59 = vpop.permute.xlu1 %322 }
 0x19e   :  { %v348_v61 = vmul.f32 %v323_v59, %v612_v12 }
 0x1a0   :  { %v358_v2 = vsel %vm41_vm0, %v348_v61, 0.0 }
 0x1a1   :  { %v359_v0 = vadd.f32 %v358_v2, %v357_v63  ;;  %v338_v3 = vpop.permute.xlu0 %337 }
 0x1a2   :  { %v351_v5 = vmul.f32 %v338_v3, %v629_v20 }
 0x1a3   :  { %v361_v1 = vadd.f32 %v360_v6, %v359_v0 }
 0x1a4   :  { %v364_v13 = vsel %vm41_vm0, %v351_v5, 0.0 }
 0x1a5   :  { %v363_v8 = vadd.f32 %v362_v4, %v361_v1 }
 0x1a7   :  { %v365_v10 = vadd.f32 %v364_v13, %v363_v8 }
 0x1a9   :  { %v343_v9 = vpop.permute.xlu1 %342 }
 0x1aa   :  { %v352_v12 = vmul.f32 %v343_v9, %v633_v23 }
 0x1ac   :  { %v366_v14 = vsel %vm41_vm0, %v352_v12, 0.0 }
 0x1ad   :  { %v367_v15 = vadd.f32 %v366_v14, %v365_v10 }
 0x1af   :  { %v368_v16 = vadd.f32 %v367_v15, %v304_v11 }
 0x1b1   :  { %369 = vst.msk [vmem:[#allocation2] sm:$0xff] %vm41_vm0, %v368_v16 }
 0x1b8   :  { %v396_v19 = vld [vmem:[#allocation2] sm:$0xff] }
 0x1cc   :  { %v401_v18 = vpop.permute.xlu2 %400 }
 0x1cd   :  { %v403_v20 = vmul.f32 %v401_v18, %v397_v17 }
 0x1cf   :  { %v404_v21 = vsub.f32 %v396_v19, %v403_v20 }
 0x1d1   :  { %405 = vst.msk [vmem:[#allocation9] sm:$0xff] %vm41_vm0, %v404_v21 }
 0x1d2   :  { %416 = dma.vmem_to_hbm [thread:$0]  %s412_s16, 128, %s414_s19, [#allocation8]  }
 0x1d3   :  { %544 = dma.done.wait [#allocation8], 128  }
 0x1d4   :  { %545 = vsyncadd [#allocation8], 4294967168 }
 0x1d5   :  { %421 = vsyncpa [#allocation7], 1 }
 0x1d6   :  { %422 = vsyncpa [#allocation8], 1 }

</bundles_post_ra>
